<compile_context>
chip_gen: v7x
topology: tpu7x:2x2x1
jax: 0.10.0
libtpu: 0.0.40
codegen_flags: <defaults>
</compile_context>

<pallas_src>
import jax
import jax.numpy as jnp
from jax.experimental import pallas as pl
from jax.experimental.pallas import tpu as pltpu

ACTION_SIZE = 4
IN_FEATURES = 2
H1, H2, H3 = 128, 128, 64
H3P = 128          # fc3 width padded to a full lane vreg (VMEM-only cost)
OUT_PAD = 8        # output lanes padded 4 -> 8 only (sublane-friendly, tiny DMA)
DEFAULT_TILE_M = 4096


def _round_up(x, m):
    return ((x + m - 1) // m) * m


def qnetwork_kernel(x_ref,
                    w1_ref, b1_ref,
                    w2_ref, b2_ref,
                    w3_ref, b3_ref,
                    w4_ref, b4_ref,
                    out_ref):
    """One [TILE_M, IN_FEATURES] batch tile -> [TILE_M, OUT_PAD] Q-values."""
    x = x_ref[...]            # (TILE_M, 2), f32
    w1 = w1_ref[...]          # (2, 128), f32

    # fc1 + relu: K=2, so do it on the VPU as two broadcast FMAs
    # instead of a padded 128-K MXU pass.
    h = x[:, 0:1] * w1[0:1, :] + x[:, 1:2] * w1[1:2, :] + b1_ref[...]
    h = jnp.maximum(h, 0.0)

    # fc2 + relu: bf16 MXU operands, f32 accumulation, f32 bias/ReLU.
    h = jnp.dot(h.astype(jnp.bfloat16), w2_ref[...],
                preferred_element_type=jnp.float32) + b2_ref[...]
    h = jnp.maximum(h, 0.0)

    # fc3 + relu (output lanes padded 64 -> 128; padded cols are zero).
    h = jnp.dot(h.astype(jnp.bfloat16), w3_ref[...],
                preferred_element_type=jnp.float32) + b3_ref[...]
    h = jnp.maximum(h, 0.0)

    # output layer (no activation); N padded only to 8 -> tiny writeback.
    out = jnp.dot(h.astype(jnp.bfloat16), w4_ref[...],
                  preferred_element_type=jnp.float32) + b4_ref[...]
    out_ref[...] = out.astype(out_ref.dtype)


def qnetwork_forward(x, prepared_params, tile_m=DEFAULT_TILE_M):
    """x: [B, 1, IN_FEATURES] (mirrors the PyTorch Size([B, 1, in]) input).

    Returns [B, 1, ACTION_SIZE] float32 Q-values.
    """
    B, S, F = x.shape
    assert F == IN_FEATURES
    M = B * S
    x2d = x.reshape(M, F).astype(jnp.float32)

    # Don't over-pad tiny batches; keep tile a multiple of 8 sublanes.
    M8 = _round_up(M, 8)
    tile_m = min(tile_m, M8)
    # Ensure >= 2 grid steps when the batch allows so v7x's second TensorCore
    # gets work via the "parallel" grid axis (one extra ~0.35us step elsewhere).
    if M8 >= 16:
        tile_m = min(tile_m, _round_up((M8 + 1) // 2, 8))
    tile_m = max(8, (tile_m // 8) * 8)
    Mpad = _round_up(M, tile_m)
    if Mpad != M:
        x2d = jnp.pad(x2d, ((0, Mpad - M), (0, 0)))

    (w1, b1), (w2, b2), (w3, b3), (w4, b4) = prepared_params

    grid = (Mpad // tile_m,)
    # Weights/biases: block index constant across the grid -> stay VMEM-resident.
    wspec = lambda shape: pl.BlockSpec(shape, lambda i: (0, 0))

    out2d = pl.pallas_call(
        qnetwork_kernel,
        out_shape=jax.ShapeDtypeStruct((Mpad, OUT_PAD), jnp.float32),
        grid=grid,
        in_specs=[
            pl.BlockSpec((tile_m, IN_FEATURES), lambda i: (i, 0)),
            wspec((IN_FEATURES, H1)), wspec((1, H1)),
            wspec((H1, H2)), wspec((1, H2)),
            wspec((H2, H3P)), wspec((1, H3P)),
            wspec((H3P, OUT_PAD)), wspec((1, OUT_PAD)),
        ],
        out_specs=pl.BlockSpec((tile_m, OUT_PAD), lambda i: (i, 0)),
        compiler_params=pltpu.CompilerParams(
            dimension_semantics=("parallel",)),
    )(x2d, w1, b1, w2, b2, w3, b3, w4, b4)

    return out2d[:M, :ACTION_SIZE].reshape(B, S, ACTION_SIZE)


def init_params(key):
    """Logical (unpadded, f32) parameters: kaiming-normal weights, zero biases.

    Weights are stored transposed vs. PyTorch: shape [in, out].
    """
    def kaiming(key, fan_in, fan_out):
        std = jnp.sqrt(2.0 / fan_in)
        return jax.random.normal(key, (fan_in, fan_out), jnp.float32) * std

    k1, k2, k3, k4 = jax.random.split(key, 4)
    w1 = kaiming(k1, IN_FEATURES, H1); b1 = jnp.zeros((1, H1), jnp.float32)
    w2 = kaiming(k2, H1, H2);          b2 = jnp.zeros((1, H2), jnp.float32)
    w3 = kaiming(k3, H2, H3);          b3 = jnp.zeros((1, H3), jnp.float32)
    w4 = kaiming(k4, H3, ACTION_SIZE); b4 = jnp.zeros((1, ACTION_SIZE), jnp.float32)
    return ((w1, b1), (w2, b2), (w3, b3), (w4, b4))


def prepare_params(params):
    """Host-side one-time prep: bf16 MXU weights, minimal padding."""
    (w1, b1), (w2, b2), (w3, b3), (w4, b4) = params

    # fc1 stays f32 (VPU outer-product path; also v5e has no bf16 VPU).
    w1p = w1.astype(jnp.float32)
    b1p = b1.astype(jnp.float32)

    # fc2: bf16 weights, f32 bias.
    w2p = w2.astype(jnp.bfloat16)
    b2p = b2.astype(jnp.float32)

    # fc3: pad output width 64 -> 128 (zero cols => padded activations stay 0).
    w3p = jnp.zeros((H2, H3P), jnp.bfloat16).at[:, :H3].set(w3.astype(jnp.bfloat16))
    b3p = jnp.zeros((1, H3P), jnp.float32).at[:, :H3].set(b3)

    # output: pad [64, 4] -> [128, 8]; only 8 output lanes => ~16x less writeback.
    w4p = jnp.zeros((H3P, OUT_PAD), jnp.bfloat16).at[:H3, :ACTION_SIZE].set(
        w4.astype(jnp.bfloat16))
    b4p = jnp.zeros((1, OUT_PAD), jnp.float32).at[:, :ACTION_SIZE].set(b4)

    return ((w1p, b1p), (w2p, b2p), (w3p, b3p), (w4p, b4p))


def reference_forward(x, params):
    """Pure-JAX f32 reference for validation."""
    (w1, b1), (w2, b2), (w3, b3), (w4, b4) = params
    h = x.astype(jnp.float32)
    h = jnp.maximum(h @ w1 + b1, 0.0)
    h = jnp.maximum(h @ w2 + b2, 0.0)
    h = jnp.maximum(h @ w3 + b3, 0.0)
    return h @ w4 + b4


if __name__ == "__main__":
    key = jax.random.PRNGKey(0)
    k_param, k_x1, k_x2 = jax.random.split(key, 3)

    params = init_params(k_param)
    prepared = prepare_params(params)

    # Small batch (matches the PyTorch [B, 1, 2] usage).
    x_small = jax.random.normal(k_x1, (2, 1, IN_FEATURES), jnp.float32)
    out_small = jax.block_until_ready(qnetwork_forward(x_small, prepared))
    ref_small = reference_forward(x_small, params)
    assert out_small.shape == (2, 1, ACTION_SIZE), out_small.shape
    # bf16 MXU operands (f32 accumulation) loosen the tolerance vs. pure f32.
    assert jnp.allclose(out_small, ref_small, atol=3e-2, rtol=3e-2)

    # Larger batch exercising the multi-tile pipelined grid + padding path.
    x_big = jax.random.normal(k_x2, (600, 1, IN_FEATURES), jnp.float32)
    out_big = jax.block_until_ready(qnetwork_forward(x_big, prepared))
    ref_big = reference_forward(x_big, params)
    assert out_big.shape == (600, 1, ACTION_SIZE), out_big.shape
    assert jnp.allclose(out_big, ref_big, atol=3e-2, rtol=3e-2)

    print("KERNEL_OK")
</pallas_src>

<mosaic_0001>
module attributes {stable_mosaic.version = 11 : i64} {
  func.func @qnetwork_kernel(%arg0: i32, %arg1: memref<8x2xf32, #tpu.memory_space<vmem>>, %arg2: memref<2x128xf32, #tpu.memory_space<vmem>>, %arg3: memref<1x128xf32, #tpu.memory_space<vmem>>, %arg4: memref<128x128xbf16, #tpu.memory_space<vmem>>, %arg5: memref<1x128xf32, #tpu.memory_space<vmem>>, %arg6: memref<128x128xbf16, #tpu.memory_space<vmem>>, %arg7: memref<1x128xf32, #tpu.memory_space<vmem>>, %arg8: memref<128x8xbf16, #tpu.memory_space<vmem>>, %arg9: memref<1x8xf32, #tpu.memory_space<vmem>>, %arg10: memref<8x8xf32, #tpu.memory_space<vmem>>) attributes {dimension_semantics = [#tpu.dimension_semantics<parallel>], iteration_bounds = array<i64: 1>, scalar_prefetch = 0 : i64, scratch_operands = 0 : i64, tpu.core_type = #tpu.core_type<tc>, window_params = [{transform_indices = @transform_0, window_bounds = array<i64: 8, 2>}, {pipeline_mode = #tpu.pipeline_mode<synchronous>, transform_indices = @transform_1, window_bounds = array<i64: 2, 128>}, {pipeline_mode = #tpu.pipeline_mode<synchronous>, transform_indices = @transform_2, window_bounds = array<i64: 1, 128>}, {pipeline_mode = #tpu.pipeline_mode<synchronous>, transform_indices = @transform_3, window_bounds = array<i64: 128, 128>}, {pipeline_mode = #tpu.pipeline_mode<synchronous>, transform_indices = @transform_4, window_bounds = array<i64: 1, 128>}, {pipeline_mode = #tpu.pipeline_mode<synchronous>, transform_indices = @transform_5, window_bounds = array<i64: 128, 128>}, {pipeline_mode = #tpu.pipeline_mode<synchronous>, transform_indices = @transform_6, window_bounds = array<i64: 1, 128>}, {pipeline_mode = #tpu.pipeline_mode<synchronous>, transform_indices = @transform_7, window_bounds = array<i64: 128, 8>}, {pipeline_mode = #tpu.pipeline_mode<synchronous>, transform_indices = @transform_8, window_bounds = array<i64: 1, 8>}, {transform_indices = @transform_9, window_bounds = array<i64: 8, 8>}]} {
    %c0 = arith.constant 0 : index
    %c0_0 = arith.constant 0 : index
    %0 = vector.load %arg1[%c0, %c0_0] : memref<8x2xf32, #tpu.memory_space<vmem>>, vector<8x2xf32>
    %c0_1 = arith.constant 0 : index
    %c0_2 = arith.constant 0 : index
    %1 = vector.load %arg2[%c0_1, %c0_2] : memref<2x128xf32, #tpu.memory_space<vmem>>, vector<2x128xf32>
    %2 = vector.extract_strided_slice %0 {offsets = [0, 0], sizes = [8, 1], strides = [1, 1]} : vector<8x2xf32> to vector<8x1xf32>
    %3 = vector.extract_strided_slice %1 {offsets = [0, 0], sizes = [1, 128], strides = [1, 1]} : vector<2x128xf32> to vector<1x128xf32>
    %4 = vector.broadcast %2 : vector<8x1xf32> to vector<8x128xf32>
    %5 = vector.broadcast %3 : vector<1x128xf32> to vector<8x128xf32>
    %6 = arith.mulf %4, %5 : vector<8x128xf32>
    %7 = vector.extract_strided_slice %0 {offsets = [0, 1], sizes = [8, 1], strides = [1, 1]} : vector<8x2xf32> to vector<8x1xf32>
    %8 = vector.extract_strided_slice %1 {offsets = [1, 0], sizes = [1, 128], strides = [1, 1]} : vector<2x128xf32> to vector<1x128xf32>
    %9 = vector.broadcast %7 : vector<8x1xf32> to vector<8x128xf32>
    %10 = vector.broadcast %8 : vector<1x128xf32> to vector<8x128xf32>
    %11 = arith.mulf %9, %10 : vector<8x128xf32>
    %12 = arith.addf %6, %11 : vector<8x128xf32>
    %c0_3 = arith.constant 0 : index
    %c0_4 = arith.constant 0 : index
    %13 = vector.load %arg3[%c0_3, %c0_4] : memref<1x128xf32, #tpu.memory_space<vmem>>, vector<1x128xf32>
    %14 = vector.broadcast %13 : vector<1x128xf32> to vector<8x128xf32>
    %15 = arith.addf %12, %14 : vector<8x128xf32>
    %cst = arith.constant 0.000000e+00 : f32
    %16 = vector.broadcast %cst : f32 to vector<8x128xf32>
    %17 = arith.maximumf %15, %16 : vector<8x128xf32>
    %18 = arith.truncf %17 : vector<8x128xf32> to vector<8x128xbf16>
    %c0_5 = arith.constant 0 : index
    %c0_6 = arith.constant 0 : index
    %19 = vector.load %arg4[%c0_5, %c0_6] : memref<128x128xbf16, #tpu.memory_space<vmem>>, vector<128x128xbf16>
    %cst_7 = arith.constant dense<0.000000e+00> : vector<8x128xf32>
    %20 = tpu.matmul %18, %19, %cst_7 {dimension_numbers = #tpu.dot_dimension_numbers<[1], [0], [0], [1], [0, 0, 1, 1], [], []>} : vector<8x128xbf16>, vector<128x128xbf16>, vector<8x128xf32> -> vector<8x128xf32>
    %c0_8 = arith.constant 0 : index
    %c0_9 = arith.constant 0 : index
    %21 = vector.load %arg5[%c0_8, %c0_9] : memref<1x128xf32, #tpu.memory_space<vmem>>, vector<1x128xf32>
    %22 = vector.broadcast %21 : vector<1x128xf32> to vector<8x128xf32>
    %23 = arith.addf %20, %22 : vector<8x128xf32>
    %cst_10 = arith.constant 0.000000e+00 : f32
    %24 = vector.broadcast %cst_10 : f32 to vector<8x128xf32>
    %25 = arith.maximumf %23, %24 : vector<8x128xf32>
    %26 = arith.truncf %25 : vector<8x128xf32> to vector<8x128xbf16>
    %c0_11 = arith.constant 0 : index
    %c0_12 = arith.constant 0 : index
    %27 = vector.load %arg6[%c0_11, %c0_12] : memref<128x128xbf16, #tpu.memory_space<vmem>>, vector<128x128xbf16>
    %cst_13 = arith.constant dense<0.000000e+00> : vector<8x128xf32>
    %28 = tpu.matmul %26, %27, %cst_13 {dimension_numbers = #tpu.dot_dimension_numbers<[1], [0], [0], [1], [0, 0, 1, 1], [], []>} : vector<8x128xbf16>, vector<128x128xbf16>, vector<8x128xf32> -> vector<8x128xf32>
    %c0_14 = arith.constant 0 : index
    %c0_15 = arith.constant 0 : index
    %29 = vector.load %arg7[%c0_14, %c0_15] : memref<1x128xf32, #tpu.memory_space<vmem>>, vector<1x128xf32>
    %30 = vector.broadcast %29 : vector<1x128xf32> to vector<8x128xf32>
    %31 = arith.addf %28, %30 : vector<8x128xf32>
    %cst_16 = arith.constant 0.000000e+00 : f32
    %32 = vector.broadcast %cst_16 : f32 to vector<8x128xf32>
    %33 = arith.maximumf %31, %32 : vector<8x128xf32>
    %34 = arith.truncf %33 : vector<8x128xf32> to vector<8x128xbf16>
    %c0_17 = arith.constant 0 : index
    %c0_18 = arith.constant 0 : index
    %35 = vector.load %arg8[%c0_17, %c0_18] : memref<128x8xbf16, #tpu.memory_space<vmem>>, vector<128x8xbf16>
    %cst_19 = arith.constant dense<0.000000e+00> : vector<8x8xf32>
    %36 = tpu.matmul %34, %35, %cst_19 {dimension_numbers = #tpu.dot_dimension_numbers<[1], [0], [0], [1], [0, 0, 1, 1], [], []>} : vector<8x128xbf16>, vector<128x8xbf16>, vector<8x8xf32> -> vector<8x8xf32>
    %c0_20 = arith.constant 0 : index
    %c0_21 = arith.constant 0 : index
    %37 = vector.load %arg9[%c0_20, %c0_21] : memref<1x8xf32, #tpu.memory_space<vmem>>, vector<1x8xf32>
    %38 = vector.broadcast %37 : vector<1x8xf32> to vector<8x8xf32>
    %39 = arith.addf %36, %38 : vector<8x8xf32>
    %c0_22 = arith.constant 0 : index
    %c0_23 = arith.constant 0 : index
    %40 = vector.load %arg10[%c0_22, %c0_23] : memref<8x8xf32, #tpu.memory_space<vmem>>, vector<8x8xf32>
    tpu.vector_store %arg10[%c0_22, %c0_23], %39 {strides = array<i32>} : memref<8x8xf32, #tpu.memory_space<vmem>>, vector<8x8xf32>,
    return
  }
  func.func @transform_0(%arg0: i32) -> (i32, i32) {
    %c0_i32 = arith.constant 0 : i32
    %c0_i32_0 = arith.constant 0 : i32
    return %arg0, %c0_i32 : i32, i32
  }
  func.func @transform_1(%arg0: i32) -> (i32, i32) {
    %c0_i32 = arith.constant 0 : i32
    %c0_i32_0 = arith.constant 0 : i32
    %c0_i32_1 = arith.constant 0 : i32
    return %c0_i32, %c0_i32_0 : i32, i32
  }
  func.func @transform_2(%arg0: i32) -> (i32, i32) {
    %c0_i32 = arith.constant 0 : i32
    %c0_i32_0 = arith.constant 0 : i32
    %c0_i32_1 = arith.constant 0 : i32
    return %c0_i32, %c0_i32_0 : i32, i32
  }
  func.func @transform_3(%arg0: i32) -> (i32, i32) {
    %c0_i32 = arith.constant 0 : i32
    %c0_i32_0 = arith.constant 0 : i32
    %c0_i32_1 = arith.constant 0 : i32
    return %c0_i32, %c0_i32_0 : i32, i32
  }
  func.func @transform_4(%arg0: i32) -> (i32, i32) {
    %c0_i32 = arith.constant 0 : i32
    %c0_i32_0 = arith.constant 0 : i32
    %c0_i32_1 = arith.constant 0 : i32
    return %c0_i32, %c0_i32_0 : i32, i32
  }
  func.func @transform_5(%arg0: i32) -> (i32, i32) {
    %c0_i32 = arith.constant 0 : i32
    %c0_i32_0 = arith.constant 0 : i32
    %c0_i32_1 = arith.constant 0 : i32
    return %c0_i32, %c0_i32_0 : i32, i32
  }
  func.func @transform_6(%arg0: i32) -> (i32, i32) {
    %c0_i32 = arith.constant 0 : i32
    %c0_i32_0 = arith.constant 0 : i32
    %c0_i32_1 = arith.constant 0 : i32
    return %c0_i32, %c0_i32_0 : i32, i32
  }
  func.func @transform_7(%arg0: i32) -> (i32, i32) {
    %c0_i32 = arith.constant 0 : i32
    %c0_i32_0 = arith.constant 0 : i32
    %c0_i32_1 = arith.constant 0 : i32
    return %c0_i32, %c0_i32_0 : i32, i32
  }
  func.func @transform_8(%arg0: i32) -> (i32, i32) {
    %c0_i32 = arith.constant 0 : i32
    %c0_i32_0 = arith.constant 0 : i32
    %c0_i32_1 = arith.constant 0 : i32
    return %c0_i32, %c0_i32_0 : i32, i32
  }
  func.func @transform_9(%arg0: i32) -> (i32, i32) {
    %c0_i32 = arith.constant 0 : i32
    %c0_i32_0 = arith.constant 0 : i32
    return %arg0, %c0_i32 : i32, i32
  }
}

</mosaic_0001>

<bundles_post_ra>
// kernel: tpu_custom_call.1
= control target key start
LH: loop header
LB: loop body
LE: loop exit
PB: predicated region body
PF: predicated region fallthrough
CT: control target
= control target key end

     0   :  { %14 = vsyncpa [#allocation3], 0  ;;  %s809_s0 = inlined_call_operand.vmem [shape: f32[8,2], index: 0, kind: input, shape index: {}]   ;;  %s810_s1 = inlined_call_operand.vmem [shape: f32[2,128], index: 1, kind: input, shape index: {}]   ;;  %s811_s2 = inlined_call_operand.vmem [shape: f32[1,128], index: 2, kind: input, shape index: {}]   ;;  %s812_s3 = inlined_call_operand.vmem [shape: bf16[128,128], index: 3, kind: input, shape index: {}]   ;;  %s813_s4 = inlined_call_operand.vmem [shape: f32[1,128], index: 4, kind: input, shape index: {}]   ;;  %s814_s5 = inlined_call_operand.hbm [shape: bf16[128,128], index: 5, kind: input, shape index: {}]   ;;  %s815_s6 = inlined_call_operand.vmem [shape: f32[1,128], index: 6, kind: input, shape index: {}]   ;;  %s816_s7 = inlined_call_operand.vmem [shape: bf16[128,8], index: 7, kind: input, shape index: {}]   ;;  %s817_s8 = inlined_call_operand.vmem [shape: f32[1,8], index: 8, kind: input, shape index: {}]   ;;  %s818_s9 = inlined_call_operand.hbm [shape: f32[8,8], index: 9, kind: output, shape index: {}]  }
   0x1   :  { %15 = vsyncpa [#allocation4], 0  ;;  %s631_s30 = smov [#allocation2]   ;;  %s583_s13 = scalar_lea.hbm %s814_s5, 1024 }
   0x2   :  { %s31_s10 = sshll.u32 %s631_s30, 4  ;;  %p584_p0 = scmp.ne.s32.totalorder %s814_s5, %s583_s13  ;;  %s32_s10 = int_to_ptr.vmem [resolvable:$true] %s31_s10 }
   0x3   :  { %p587_p1 = scmp.lt.u32.totalorder %s583_s13, %s814_s5 }
   0x5   :  { %p589_p2 = pnand %p587_p1, %p584_p0 }
   0x7   :  { %592 = shalt.err (!%p589_p2)
}
   0x8   :  { %s593_s18 = scalar_lea.vmem %s32_s10, 1024  ;;  %p598_p4 = scmp.lt.s32.totalorder %s32_s10, %s32_s10 }
   0x9   :  { %p594_p3 = scmp.ne.s32.totalorder %s32_s10, %s593_s18  ;;  %p599_p5 = scmp.lt.s32.totalorder %s593_s18, %s593_s18 }
   0xb   :  { %p600_p6 = por %p599_p5, %p598_p4 }
   0xd   :  { %p601_p7 = pnand %p600_p6, %p594_p3 }
   0xf   :  { %604 = shalt.err (!%p601_p7)
}
  0x10   :  { %s632_s19 = smov 64   ;;  %s633_s20 = smov 4  }
  0x11   :  { %37 = dma.hbm_to_vmem [thread:$0]  %s814_s5, 1024, %s32_s10, [#allocation3], %s632_s19, %s632_s19, %s633_s20  }
  0x12   :  { %627 = dma.done.wait [#allocation3], 1024  }
  0x13   :  { %628 = vsyncadd [#allocation3], 4294966272  ;;  %v634_v0 = vmov 0   ;;  %v635_v1 = vmov 0.0   ;;  %v48_v2 = vld [vmem:[%s809_s0] sm:$0xff]  ;;  %v560_v4 = vld [vmem:[%s812_s3 + $0x8] sm:$0xff]   ;;  %v55_v18 = vlaneseq }
  0x14   :  { %557 = vset.pattern.permute.xlu0 %v634_v0  ;;  %489 = vmatprep.subr.bf16.mxu0 %v635_v1  ;;  %v559_v3 = vld [vmem:[%s812_s3] sm:$0xff]   ;;  %v636_v5 = vmov 1   ;;  %v561_v6 = vld [vmem:[%s812_s3 + $0x10] sm:$0xff]   ;;  %v562_v7 = vld [vmem:[%s812_s3 + $0x18] sm:$0xff]   ;;  %vm637_vm0 = vmmov 0   ;;  %s638_s17 = smov [#allocation5]  }
  0x15   :  { %509 = vmatprep.subr.bf16.mxu1 %v635_v1  ;;  %52 = vperm.xlu0 %557, %v48_v2   ;;  %v563_v8 = vld [vmem:[%s812_s3 + $0x20] sm:$0xff]   ;;  %v567_v9 = vld [vmem:[#allocation2] sm:$0xff]   ;;  %v568_v11 = vld [vmem:[#allocation2 + $0x8] sm:$0xff]   ;;  %v56_v19 = vshrl.u32 %v55_v18, 7  ;;  %vm417_vm1 = vcmask 64512  }
  0x16   :  { %490 = vmatpush3.bf16.msra.mxu0 %v559_v3  ;;  %505 = vmatprep.mubr.msk.bf16.mxu0 %vm637_vm0, %v635_v1  ;;  %v564_v10 = vld [vmem:[%s812_s3 + $0x28] sm:$0xff]   ;;  %v569_v12 = vld [vmem:[#allocation2 + $0x10] sm:$0xff]   ;;  %v565_v13 = vld [vmem:[%s812_s3 + $0x30] sm:$0xff]  }
  0x17   :  { %491 = vmatprep.subr.bf16.mxu0 %v635_v1  ;;  %525 = vmatprep.mubr.msk.bf16.mxu1 %vm637_vm0, %v635_v1  ;;  %v570_v14 = vld [vmem:[#allocation2 + $0x18] sm:$0xff]   ;;  %v566_v15 = vld [vmem:[%s812_s3 + $0x38] sm:$0xff]   ;;  %v571_v16 = vld [vmem:[#allocation2 + $0x20] sm:$0xff]   ;;  %v57_v20 = vsub.s32 0, %v56_v19  ;;  %v66_v21 = vsub.s32 1, %v56_v19  ;;  %s425_s3 = sshll.u32 %s638_s17, 4  ;;  %s426_s3 = int_to_ptr.vmem [resolvable:$true] %s425_s3 }
  0x18   :  { %510 = vmatpush3.bf16.msra.mxu1 %v567_v9  ;;  %v572_v17 = vld [vmem:[#allocation2 + $0x28] sm:$0xff]   ;;  %v49_v22 = vld [vmem:[%s810_s1] sm:$0x3]  ;;  %v573_v34 = vld [vmem:[#allocation2 + $0x30] sm:$0xff]   ;;  %p610_p9 = scmp.lt.s32.totalorder %s426_s3, %s426_s3 }
  0x19   :  { %558 = vset.pattern.permute.xlu0 %v636_v5  ;;  %511 = vmatprep.subr.bf16.mxu1 %v635_v1  ;;  %v58_v24 = vrot.slane %v49_v22, %v57_v20  ;;  %v67_v25 = vrot.slane %v49_v22, %v66_v21  ;;  %v434_v29 = vld [vmem:[%s811_s2] ss:$0 sm:$0xff]  ;;  %v576_v37 = vld [vmem:[%s816_s7 + $0x8] sm:$0xff]   ;;  %v577_v38 = vld [vmem:[%s816_s7 + $0x10] sm:$0xff]  }
  0x1a   :  { %61 = vperm.xlu0 %558, %v48_v2   ;;  %492 = vmatpush3.bf16.msra.mxu0 %v560_v4  ;;  %v574_v35 = vld [vmem:[#allocation2 + $0x38] sm:$0xff]   ;;  %v578_v39 = vld [vmem:[%s816_s7 + $0x18] sm:$0xff]   ;;  %v580_v41 = vld [vmem:[%s816_s7 + $0x28] sm:$0xff]  }
  0x1b   :  { %493 = vmatprep.subr.bf16.mxu0 %v635_v1  ;;  %v575_v36 = vld [vmem:[%s816_s7] sm:$0xff]   ;;  %v581_v50 = vld [vmem:[%s816_s7 + $0x30] sm:$0xff]   ;;  %v582_v51 = vld [vmem:[%s816_s7 + $0x38] sm:$0xff]  }
  0x1c   :  { %512 = vmatpush3.bf16.msra.mxu1 %v568_v11  ;;  %v579_v40 = vld [vmem:[%s816_s7 + $0x20] sm:$0xff]  }
  0x1d   :  { %513 = vmatprep.subr.bf16.mxu1 %v635_v1  ;;  %v435_v42 = vld [vmem:[%s813_s4] ss:$0 sm:$0xff] }
  0x1e   :  { %494 = vmatpush3.bf16.msra.mxu0 %v561_v6  ;;  %v444_v52 = vld [vmem:[%s815_s6] ss:$0 sm:$0xff]  ;;  %s605_s6 = scalar_lea.vmem %s426_s3, 128 }
  0x1f   :  { %495 = vmatprep.subr.bf16.mxu0 %v635_v1  ;;  %v453_v60 = vld [vmem:[%s817_s8] ss:$0 sm:$0xff]  ;;  %p606_p8 = scmp.ne.s32.totalorder %s426_s3, %s605_s6  ;;  %p611_p10 = scmp.lt.s32.totalorder %s605_s6, %s605_s6 }
  0x20   :  { %514 = vmatpush3.bf16.msra.mxu1 %v569_v12 }
  0x21   :  { %515 = vmatprep.subr.bf16.mxu1 %v635_v1  ;;  %p612_p11 = por %p611_p10, %p610_p9 }
  0x22   :  { %496 = vmatpush3.bf16.msra.mxu0 %v562_v7 }
  0x23   :  { %497 = vmatprep.subr.bf16.mxu0 %v635_v1  ;;  %p613_p12 = pnand %p612_p11, %p606_p8 }
  0x24   :  { %516 = vmatpush3.bf16.msra.mxu1 %v570_v14 }
  0x25   :  { %517 = vmatprep.subr.bf16.mxu1 %v635_v1 }
  0x26   :  { %498 = vmatpush3.bf16.msra.mxu0 %v563_v8 }
  0x27   :  { %499 = vmatprep.subr.bf16.mxu0 %v635_v1 }
  0x28   :  { %518 = vmatpush3.bf16.msra.mxu1 %v571_v16 }
  0x29   :  { %519 = vmatprep.subr.bf16.mxu1 %v635_v1 }
  0x2a   :  { %500 = vmatpush3.bf16.msra.mxu0 %v564_v10 }
  0x2b   :  { %501 = vmatprep.subr.bf16.mxu0 %v635_v1 }
  0x2c   :  { %520 = vmatpush3.bf16.msra.mxu1 %v572_v17 }
  0x2d   :  { %521 = vmatprep.subr.bf16.mxu1 %v635_v1 }
  0x2e   :  { %502 = vmatpush3.bf16.msra.mxu0 %v565_v13 }
  0x2f   :  { %503 = vmatprep.subr.bf16.mxu0 %v635_v1 }
  0x30   :  { %522 = vmatpush3.bf16.msra.mxu1 %v573_v34 }
  0x31   :  { %523 = vmatprep.subr.bf16.mxu1 %v635_v1 }
  0x32   :  { %504 = vmatpush3.bf16.msra.mxu0 %v566_v15 }
  0x33   :  { %529 = vmatprep.subr.bf16.mxu0 %v635_v1 }
  0x34   :  { %524 = vmatpush3.bf16.msra.mxu1 %v574_v35 }
  0x94   :  { %v53_v23 = vpop.permute.xlu0 %52 }
  0x95   :  { %v59_v27 = vmul.f32 %v58_v24, %v53_v23 }
  0x99   :  { %v62_v26 = vpop.permute.xlu0 %61 }
  0x9a   :  { %v68_v28 = vmul.f32 %v67_v25, %v62_v26 }
  0x9c   :  { %v69_v30 = vadd.f32 %v68_v28, %v59_v27 }
  0x9e   :  { %v77_v31 = vadd.f32 %v434_v29, %v69_v30 }
  0xa0   :  { %v78_v32 = vmax.f32 %v77_v31, 0.0 }
  0xa2   :  { %v79_v33 = vpack.c.bf16 %v78_v32, %v78_v32 }
  0xa4   :  { %506 = vmatmul.mubr.bf16.vlgmr.msra.gmra.mrb[0].mxu0 %v79_v33 }
  0xa5   :  { %545 = vmatprep.mubr.msk.bf16.mxu0 %vm637_vm0, %v635_v1  ;;  %530 = vmatpush3.bf16.msra.mxu0 %v575_v36 }
  0xa6   :  { %531 = vmatprep.subr.bf16.mxu0 %v635_v1 }
  0xa9   :  { %532 = vmatpush3.bf16.msra.mxu0 %v576_v37 }
  0xaa   :  { %533 = vmatprep.subr.bf16.mxu0 %v635_v1 }
  0xad   :  { %534 = vmatpush3.bf16.msra.mxu0 %v577_v38 }
  0xae   :  { %535 = vmatprep.subr.bf16.mxu0 %v635_v1 }
  0xb1   :  { %536 = vmatpush3.bf16.msra.mxu0 %v578_v39 }
  0xb2   :  { %537 = vmatprep.subr.bf16.mxu0 %v635_v1 }
  0xb5   :  { %538 = vmatpush3.bf16.msra.mxu0 %v579_v40 }
  0xb6   :  { %539 = vmatprep.subr.bf16.mxu0 %v635_v1 }
  0xb9   :  { %540 = vmatpush3.bf16.msra.mxu0 %v580_v41 }
  0xba   :  { %541 = vmatprep.subr.bf16.mxu0 %v635_v1 }
  0xbd   :  { %542 = vmatpush3.bf16.msra.mxu0 %v581_v50 }
  0xbe   :  { %543 = vmatprep.subr.bf16.mxu0 %v635_v1 }
  0xc1   :  { %544 = vmatpush3.bf16.msra.mxu0 %v582_v51 }
 0x177   :  { %v185_v43 = vpop.f32.mrb[0].mxu0 }
 0x178   :  { %v186_v44 = vadd.f32 %v435_v42, %v185_v43  ;;  %v507_v45 = vpop.f32.mrb[1].mxu0 }
 0x179   :  { %v188_v46 = vpop.f32.mrb[2].mxu0 }
 0x17a   :  { %v191_v47 = vmax.f32 %v186_v44, 0.0  ;;  %v508_v48 = vpop.f32.mrb[3].mxu0 }
 0x17c   :  { %v192_v49 = vpack.c.bf16 %v191_v47, %v191_v47 }
 0x17e   :  { %526 = vmatmul.mubr.bf16.vlgmr.msra.gmra.mrb[0].mxu1 %v192_v49 }
 0x251   :  { %v298_v53 = vpop.f32.mrb[0].mxu1 }
 0x252   :  { %v299_v54 = vadd.f32 %v444_v52, %v298_v53  ;;  %v527_v55 = vpop.f32.mrb[1].mxu1 }
 0x253   :  { %v301_v56 = vpop.f32.mrb[2].mxu1 }
 0x254   :  { %v304_v57 = vmax.f32 %v299_v54, 0.0  ;;  %v528_v58 = vpop.f32.mrb[3].mxu1 }
 0x256   :  { %v305_v59 = vpack.c.bf16 %v304_v57, %v304_v57 }
 0x258   :  { %546 = vmatmul.mubr.bf16.vlgmr.msra.gmra.mrb[4].mxu0 %v305_v59 }
 0x32b   :  { %v411_v61 = vpop.f32.mrb[4].mxu0 }
 0x32c   :  { %v412_v62 = vadd.f32 %v453_v60, %v411_v61  ;;  %v547_v63 = vpop.f32.mrb[5].mxu0 }
 0x32d   :  { %v414_v0 = vpop.f32.mrb[6].mxu0 }
 0x32e   :  { %v548_v1 = vpop.f32.mrb[7].mxu0  ;;  %418 = vst.msk [vmem:[#allocation5] sm:$0xff] %vm417_vm1, %v412_v62 }
 0x32f   :  { %616 = shalt.err (!%p613_p12)
}
 0x330   :  { %s617_s8 = scalar_lea.hbm %s818_s9, 128 }
 0x331   :  { %p618_p13 = scmp.ne.s32.totalorder %s818_s9, %s617_s8  ;;  %p621_p0 = scmp.lt.u32.totalorder %s617_s8, %s818_s9 }
 0x333   :  { %p623_p1 = pnand %p621_p0, %p618_p13 }
 0x335   :  { %626 = shalt.err (!%p623_p1)
}
 0x336   :  { %428 = dma.vmem_to_hbm [thread:$0]  %s426_s3, 128, %s818_s9, [#allocation4]  }
 0x337   :  { %629 = dma.done.wait [#allocation4], 128  }
 0x338   :  { %630 = vsyncadd [#allocation4], 4294967168 }
 0x339   :  { %432 = vsyncpa [#allocation3], 1 }
 0x33a   :  { %433 = vsyncpa [#allocation4], 1 }

</bundles_post_ra>
